<compile_context>
chip_gen: v6e
topology: v6e:2x2x1
jax: 0.10.0
libtpu: 0.0.40
codegen_flags: <defaults>
</compile_context>

<pallas_src>
import math

import jax
import jax.numpy as jnp
from jax.experimental import pallas as pl
from jax.experimental.pallas import tpu as pltpu


_INV_SQRT2 = 0.7071067811865476


def _gelu_exact_f32(x):
    # PyTorch nn.GELU() default is the exact (erf) GELU; computed in f32.
    # TODO(synk): tanh-approx GELU would ride the otherwise-idle EUP slot, but
    # exact erf is kept for parity with the PyTorch reference.
    return 0.5 * x * (1.0 + jax.lax.erf(x * _INV_SQRT2))


# --------------------------------------------------------------------------
# Kernels (grid = (row_tiles, hidden_k_tiles); k is the innermost reduction).
# --------------------------------------------------------------------------

def _mlp_kernel_acc(x_ref, w1_ref, b1_ref, w2_ref, b2_ref, o_ref, acc_ref):
    """Non-f32 output: accumulate fc2 partials in an f32 VMEM scratch."""
    k = pl.program_id(1)

    @pl.when(k == 0)
    def _init():
        acc_ref[...] = jnp.zeros_like(acc_ref)

    # fc1 on a (D_in, tk) column slice of W1; bias + exact GELU in f32.
    h = jnp.dot(x_ref[...], w1_ref[...], preferred_element_type=jnp.float32)
    h = _gelu_exact_f32(h + b1_ref[...])

    # Partial fc2 product for this hidden slice, accumulated in f32.
    acc_ref[...] += jnp.dot(h.astype(w2_ref.dtype), w2_ref[...],
                            preferred_element_type=jnp.float32)

    @pl.when(k == pl.num_programs(1) - 1)
    def _finalize():
        # b2 added exactly once; single fused cast+store.
        o_ref[...] = (acc_ref[...] + b2_ref[...]).astype(o_ref.dtype)


def _mlp_kernel_f32_out(x_ref, w1_ref, b1_ref, w2_ref, b2_ref, o_ref):
    """f32 output: accumulate directly into the resident output tile
    (its block index ignores k), saving tm*d_out*4 bytes of VMEM."""
    k = pl.program_id(1)

    @pl.when(k == 0)
    def _init():
        o_ref[...] = jnp.zeros_like(o_ref) + b2_ref[...]   # b2 folded once

    h = jnp.dot(x_ref[...], w1_ref[...], preferred_element_type=jnp.float32)
    h = _gelu_exact_f32(h + b1_ref[...])
    o_ref[...] += jnp.dot(h.astype(w2_ref.dtype), w2_ref[...],
                          preferred_element_type=jnp.float32)


# --------------------------------------------------------------------------
# Tile / VMEM sizing helpers (generation aware).
# --------------------------------------------------------------------------

def _round_up(n, m):
    return (n + m - 1) // m * m


def _tpu_vmem_capacity():
    try:
        return int(pltpu.get_tpu_info().vmem_capacity_bytes)
    except Exception:
        return 128 << 20          # v5e/v6e default; v7x reports 64 MiB


def _device_kind():
    try:
        return jax.devices()[0].device_kind.lower()
    except Exception:
        return ""


def _default_tiles(kind):
    if "v7" in kind:
        return 512, 256     # 64 MiB VMEM; crossover ~310 FLOP/byte
    if "v5" in kind:
        return 512, 512     # crossover ~240 FLOP/byte; MXU saturates sooner
    return 1024, 512        # v6e & default: 128 MiB VMEM, crossover ~650


def _sublane_multiple(dtype):
    # Sub-32-bit dtypes pack along sublanes: bf16 vreg is [16,128].
    return {4: 8, 2: 16, 1: 32}.get(jnp.dtype(dtype).itemsize, 8)


def _pick_row_tile(rows, desired, sublane, split_two_cores):
    tm = min(desired, _round_up(rows, sublane))
    tm = max(sublane, (tm // sublane) * sublane)
    # Only force >=2 row steps where there are 2 TensorCores to shard across.
    if split_two_cores and _round_up(rows, tm) // tm < 2 and tm > sublane:
        tm = max(sublane, ((tm // 2) // sublane) * sublane)
    return tm


def _pick_k_tile(d_hid_p, desired):
    """d_hid_p is a multiple of 128; prefer tk that is a multiple of 256."""
    if d_hid_p <= desired:
        return d_hid_p
    for align in (256, 128):
        tk = (min(desired, d_hid_p) // align) * align
        while tk >= align:
            if d_hid_p % tk == 0:
                return tk
            tk -= align
    return d_hid_p


def _vmem_estimate(tm, tk, d_in, d_out_p, bpe_c, bpe_o, use_scratch):
    est = 2 * (tm * d_in + d_in * tk + tk * d_out_p) * bpe_c   # x, W1, W2 (2-buf)
    est += 2 * (tk + d_out_p) * 4                              # biases (f32)
    est += 2 * tm * d_out_p * bpe_o                            # output tile
    if use_scratch:
        est += tm * d_out_p * 4                                # f32 accumulator
    est += 2 * tm * tk * 4                                     # fc1/GELU f32 temps
    return est


def _fit_tiles(tm, tk, d_in, d_hid_p, d_out_p, bpe_c, bpe_o, use_scratch,
               budget, sublane):
    while _vmem_estimate(tm, tk, d_in, d_out_p, bpe_c, bpe_o,
                         use_scratch) > budget:
        if tm > max(64, sublane):
            tm = max(sublane, ((tm // 2) // sublane) * sublane)
        elif tk > 128 and tk % 256 == 0 and d_hid_p % (tk // 2) == 0:
            tk //= 2
        else:
            break
    return tm, tk, _vmem_estimate(tm, tk, d_in, d_out_p, bpe_c, bpe_o,
                                  use_scratch)


# --------------------------------------------------------------------------
# Weight preparation (one-time) + forward.
# --------------------------------------------------------------------------

def prepare_mlp_weights(w1, b1, w2, b2, *, compute_dtype=jnp.bfloat16):
    """One-time prep: cast matmul operands to `compute_dtype` and zero-pad the
    hidden and output feature dims to multiples of 128. Do this once and reuse
    the result across forward calls (hoists the weight cast/pad HBM traffic
    out of the per-call path)."""
    d_in, d_hid = w1.shape
    d_out = w2.shape[1]
    d_hid_p = _round_up(d_hid, 128)
    d_out_p = _round_up(d_out, 128)
    if d_hid_p != d_hid:
        w1 = jnp.pad(w1, ((0, 0), (0, d_hid_p - d_hid)))
        b1 = jnp.pad(b1, (0, d_hid_p - d_hid))
        w2 = jnp.pad(w2, ((0, d_hid_p - d_hid), (0, 0)))
    if d_out_p != d_out:
        w2 = jnp.pad(w2, ((0, 0), (0, d_out_p - d_out)))
        b2 = jnp.pad(b2, (0, d_out_p - d_out))
    return {
        "w1": w1.astype(compute_dtype),
        "b1": b1.reshape(1, d_hid_p).astype(jnp.float32),
        "w2": w2.astype(compute_dtype),
        "b2": b2.reshape(1, d_out_p).astype(jnp.float32),
        "d_out": d_out,
        "compute_dtype": jnp.dtype(compute_dtype),
    }


def mlp_pallas_prepared(x, params, *, row_tile=None, k_tile=None):
    """Fused MLP forward with pre-prepared weights.  y = fc2(gelu(fc1(x)));
    dropout p=0.0 is identity and elided.  Output dtype follows x.dtype."""
    w1c, b1_2, w2c, b2_2 = params["w1"], params["b1"], params["w2"], params["b2"]
    D_out = params["d_out"]
    compute_dtype = params["compute_dtype"]

    *lead, D_in = x.shape
    assert D_in == w1c.shape[0], "x feature dim must match fc1 in_features"
    d_hid_p = w1c.shape[1]
    d_out_p = w2c.shape[1]
    rows = math.prod(lead) if lead else 1
    out_dtype = x.dtype
    f32_out = jnp.dtype(out_dtype) == jnp.dtype(jnp.float32)

    kind = _device_kind()
    vmem_cap = _tpu_vmem_capacity()
    def_tm, def_tk = _default_tiles(kind)
    row_tile = row_tile or def_tm
    k_tile = k_tile or def_tk

    sublane = _sublane_multiple(compute_dtype)
    split_two = "v7" in kind                      # 2 TensorCores only on v7x
    tm = _pick_row_tile(rows, row_tile, sublane, split_two)
    tk = _pick_k_tile(d_hid_p, k_tile)

    bpe_c = jnp.dtype(compute_dtype).itemsize
    bpe_o = jnp.dtype(out_dtype).itemsize
    budget = vmem_cap - (12 << 20)                # headroom for Mosaic scratch
    tm, tk, vmem_est = _fit_tiles(tm, tk, D_in, d_hid_p, d_out_p, bpe_c, bpe_o,
                                  not f32_out, budget, sublane)

    rows_p = _round_up(rows, tm)
    x2 = x.reshape(rows, D_in)
    if rows_p != rows:
        x2 = jnp.pad(x2, ((0, rows_p - rows), (0, 0)))
    if x2.dtype != compute_dtype:
        x2 = x2.astype(compute_dtype)

    grid = (rows_p // tm, d_hid_p // tk)
    n_row_steps = grid[0]

    vmem_limit = int(min(max(int(vmem_est * 1.5) + (4 << 20), 32 << 20),
                         vmem_cap - (8 << 20)))

    # W1/W2 are re-streamed once per row tile -> multiply by n_row_steps.
    cost = pl.CostEstimate(
        flops=2 * rows_p * (D_in * d_hid_p + d_hid_p * d_out_p),
        transcendentals=rows_p * d_hid_p,
        bytes_accessed=int(
            x2.size * bpe_c
            + n_row_steps * ((w1c.size + w2c.size) * bpe_c
                             + (d_hid_p + d_out_p) * 4)
            + rows_p * d_out_p * bpe_o),
    )

    in_specs = [
        pl.BlockSpec((tm, D_in), lambda i, k: (i, 0)),        # x row tile
        pl.BlockSpec((D_in, tk), lambda i, k: (0, k)),        # W1[:, k]
        pl.BlockSpec((1, tk), lambda i, k: (0, k)),           # b1[k]
        pl.BlockSpec((tk, d_out_p), lambda i, k: (k, 0)),     # W2[k, :]
        pl.BlockSpec((1, d_out_p), lambda i, k: (0, 0)),      # b2
    ]
    # TODO(synk): for very wide D_out (>=8K) on v7x, add an output-column grid
    # axis and recompute the fc1+GELU slice per output tile.
    out_spec = pl.BlockSpec((tm, d_out_p), lambda i, k: (i, 0))

    if f32_out:
        kernel = _mlp_kernel_f32_out
        scratch_shapes = []
    else:
        kernel = _mlp_kernel_acc
        scratch_shapes = [pltpu.VMEM((tm, d_out_p), jnp.float32)]

    out = pl.pallas_call(
        kernel,
        out_shape=jax.ShapeDtypeStruct((rows_p, d_out_p), out_dtype),
        grid_spec=pltpu.PrefetchScalarGridSpec(
            num_scalar_prefetch=0,
            grid=grid,
            in_specs=in_specs,
            out_specs=out_spec,
            scratch_shapes=scratch_shapes,
        ),
        compiler_params=pltpu.CompilerParams(
            dimension_semantics=("parallel", "arbitrary"),
            vmem_limit_bytes=vmem_limit,
        ),
        cost_estimate=cost,
    )(x2, w1c, b1_2, w2c, b2_2)

    return out[:rows, :D_out].reshape(*lead, D_out)


def mlp_pallas(x, w1, b1, w2, b2, *, compute_dtype=jnp.bfloat16,
               row_tile=None, k_tile=None):
    """Convenience wrapper. Prefer calling prepare_mlp_weights() once and
    mlp_pallas_prepared() per step — this path re-does the weight cast/pad."""
    params = prepare_mlp_weights(w1, b1, w2, b2, compute_dtype=compute_dtype)
    return mlp_pallas_prepared(x, params, row_tile=row_tile, k_tile=k_tile)


# --------------------------------------------------------------------------
# Reference + demo.
# --------------------------------------------------------------------------

def init_mlp_params(key, in_features, hidden_features, out_features,
                    dtype=jnp.float32):
    """Deterministic synthetic params mimicking nn.Linear's uniform init."""
    k1, k2, k3, k4 = jax.random.split(key, 4)
    lim1 = 1.0 / jnp.sqrt(in_features)
    lim2 = 1.0 / jnp.sqrt(hidden_features)
    w1 = jax.random.uniform(k1, (in_features, hidden_features), dtype, -lim1, lim1)
    b1 = jax.random.uniform(k2, (hidden_features,), dtype, -lim1, lim1)
    w2 = jax.random.uniform(k3, (hidden_features, out_features), dtype, -lim2, lim2)
    b2 = jax.random.uniform(k4, (out_features,), dtype, -lim2, lim2)
    return w1, b1, w2, b2


def mlp_reference(x, w1, b1, w2, b2):
    h = jnp.dot(x, w1) + b1
    h = 0.5 * h * (1.0 + jax.lax.erf(h * _INV_SQRT2))
    return jnp.dot(h, w2) + b2


if __name__ == "__main__":
    key = jax.random.PRNGKey(0)
    kx, kp = jax.random.split(key)

    B, N = 2, 8           # batch, sequence
    D_in, D_hid, D_out = 16, 32, 16

    x = jax.random.normal(kx, (B, N, D_in), jnp.float32)
    w1, b1, w2, b2 = init_mlp_params(kp, D_in, D_hid, D_out)
    y_ref = mlp_reference(x, w1, b1, w2, b2)

    # Default path: bf16 matmul operands (one-time weight prep), f32 accumulate,
    # f32 output accumulated directly into the resident output tile.
    params_bf16 = prepare_mlp_weights(w1, b1, w2, b2, compute_dtype=jnp.bfloat16)
    y = jax.block_until_ready(mlp_pallas_prepared(x, params_bf16))
    assert y.shape == (B, N, D_out)
    assert jnp.allclose(y, y_ref, atol=5e-2, rtol=5e-2), "bf16 mismatch vs reference"

    # f32 operand path: exact-erf parity with the PyTorch module.
    params_f32 = prepare_mlp_weights(w1, b1, w2, b2, compute_dtype=jnp.float32)
    y32 = jax.block_until_ready(mlp_pallas_prepared(x, params_f32))
    assert jnp.allclose(y32, y_ref, atol=1e-5, rtol=1e-5), "f32 mismatch vs reference"

    # bf16 output path (exercises the f32 VMEM accumulator + finalize kernel).
    y_bf = jax.block_until_ready(
        mlp_pallas_prepared(x.astype(jnp.bfloat16), params_bf16))
    assert y_bf.dtype == jnp.bfloat16
    assert jnp.allclose(y_bf.astype(jnp.float32), y_ref, atol=1e-1, rtol=1e-1), \
        "bf16-out mismatch vs reference"

    print("KERNEL_OK")
</pallas_src>

<mosaic_0001>
module attributes {stable_mosaic.version = 11 : i64} {
  func.func @_mlp_kernel_f32_out(%arg0: i32, %arg1: i32, %arg2: memref<16x16xbf16, #tpu.memory_space<vmem>>, %arg3: memref<16x128xbf16, #tpu.memory_space<vmem>>, %arg4: memref<1x128xf32, #tpu.memory_space<vmem>>, %arg5: memref<128x128xbf16, #tpu.memory_space<vmem>>, %arg6: memref<1x128xf32, #tpu.memory_space<vmem>>, %arg7: memref<16x128xf32, #tpu.memory_space<vmem>>) attributes {dimension_semantics = [#tpu.dimension_semantics<parallel>, #tpu.dimension_semantics<arbitrary>], iteration_bounds = array<i64: 1, 1>, scalar_prefetch = 0 : i64, scratch_operands = 0 : i64, tpu.core_type = #tpu.core_type<tc>, window_params = [{transform_indices = @transform_0, window_bounds = array<i64: 16, 16>}, {transform_indices = @transform_1, window_bounds = array<i64: 16, 128>}, {transform_indices = @transform_2, window_bounds = array<i64: 1, 128>}, {transform_indices = @transform_3, window_bounds = array<i64: 128, 128>}, {pipeline_mode = #tpu.pipeline_mode<synchronous>, transform_indices = @transform_4, window_bounds = array<i64: 1, 128>}, {transform_indices = @transform_5, window_bounds = array<i64: 16, 128>}]} {
    %c0_i32 = arith.constant 0 : i32
    %0 = arith.cmpi eq, %arg1, %c0_i32 : i32
    %1 = arith.extui %0 : i1 to i32
    %c0_i32_0 = arith.constant 0 : i32
    %2 = arith.cmpi ne, %1, %c0_i32_0 : i32
    scf.if %2 {
      %cst_16 = arith.constant 0.000000e+00 : f32
      %23 = vector.broadcast %cst_16 : f32 to vector<16x128xf32>
      %c0_17 = arith.constant 0 : index
      %c0_18 = arith.constant 0 : index
      %24 = vector.load %arg6[%c0_17, %c0_18] : memref<1x128xf32, #tpu.memory_space<vmem>>, vector<1x128xf32>
      %25 = vector.broadcast %24 : vector<1x128xf32> to vector<16x128xf32>
      %26 = arith.addf %23, %25 : vector<16x128xf32>
      %c0_19 = arith.constant 0 : index
      %c0_20 = arith.constant 0 : index
      %27 = vector.load %arg7[%c0_19, %c0_20] : memref<16x128xf32, #tpu.memory_space<vmem>>, vector<16x128xf32>
      tpu.vector_store %arg7[%c0_19, %c0_20], %26 {strides = array<i32>} : memref<16x128xf32, #tpu.memory_space<vmem>>, vector<16x128xf32>,
    } else {
    }
    %c0 = arith.constant 0 : index
    %c0_1 = arith.constant 0 : index
    %3 = vector.load %arg2[%c0, %c0_1] : memref<16x16xbf16, #tpu.memory_space<vmem>>, vector<16x16xbf16>
    %c0_2 = arith.constant 0 : index
    %c0_3 = arith.constant 0 : index
    %4 = vector.load %arg3[%c0_2, %c0_3] : memref<16x128xbf16, #tpu.memory_space<vmem>>, vector<16x128xbf16>
    %cst = arith.constant dense<0.000000e+00> : vector<16x128xf32>
    %5 = tpu.matmul %3, %4, %cst {dimension_numbers = #tpu.dot_dimension_numbers<[1], [0], [0], [1], [0, 0, 1, 1], [], []>} : vector<16x16xbf16>, vector<16x128xbf16>, vector<16x128xf32> -> vector<16x128xf32>
    %c0_4 = arith.constant 0 : index
    %c0_5 = arith.constant 0 : index
    %6 = vector.load %arg4[%c0_4, %c0_5] : memref<1x128xf32, #tpu.memory_space<vmem>>, vector<1x128xf32>
    %7 = vector.broadcast %6 : vector<1x128xf32> to vector<16x128xf32>
    %8 = arith.addf %5, %7 : vector<16x128xf32>
    %cst_6 = arith.constant 5.000000e-01 : f32
    %9 = vector.broadcast %cst_6 : f32 to vector<16x128xf32>
    %10 = arith.mulf %9, %8 : vector<16x128xf32>
    %cst_7 = arith.constant 0.707106769 : f32
    %11 = vector.broadcast %cst_7 : f32 to vector<16x128xf32>
    %12 = arith.mulf %8, %11 : vector<16x128xf32>
    %13 = math.erf %12 : vector<16x128xf32>
    %cst_8 = arith.constant 1.000000e+00 : f32
    %14 = vector.broadcast %cst_8 : f32 to vector<16x128xf32>
    %15 = arith.addf %14, %13 : vector<16x128xf32>
    %16 = arith.mulf %10, %15 : vector<16x128xf32>
    %c0_9 = arith.constant 0 : index
    %c0_10 = arith.constant 0 : index
    %17 = vector.load %arg7[%c0_9, %c0_10] : memref<16x128xf32, #tpu.memory_space<vmem>>, vector<16x128xf32>
    %18 = arith.truncf %16 : vector<16x128xf32> to vector<16x128xbf16>
    %c0_11 = arith.constant 0 : index
    %c0_12 = arith.constant 0 : index
    %19 = vector.load %arg5[%c0_11, %c0_12] : memref<128x128xbf16, #tpu.memory_space<vmem>>, vector<128x128xbf16>
    %cst_13 = arith.constant dense<0.000000e+00> : vector<16x128xf32>
    %20 = tpu.matmul %18, %19, %cst_13 {dimension_numbers = #tpu.dot_dimension_numbers<[1], [0], [0], [1], [0, 0, 1, 1], [], []>} : vector<16x128xbf16>, vector<128x128xbf16>, vector<16x128xf32> -> vector<16x128xf32>
    %21 = arith.addf %17, %20 : vector<16x128xf32>
    %c0_14 = arith.constant 0 : index
    %c0_15 = arith.constant 0 : index
    %22 = vector.load %arg7[%c0_14, %c0_15] : memref<16x128xf32, #tpu.memory_space<vmem>>, vector<16x128xf32>
    tpu.vector_store %arg7[%c0_14, %c0_15], %21 {strides = array<i32>} : memref<16x128xf32, #tpu.memory_space<vmem>>, vector<16x128xf32>,
    return
  }
  func.func @transform_0(%arg0: i32, %arg1: i32) -> (i32, i32) {
    %c0_i32 = arith.constant 0 : i32
    %c0_i32_0 = arith.constant 0 : i32
    return %arg0, %c0_i32 : i32, i32
  }
  func.func @transform_1(%arg0: i32, %arg1: i32) -> (i32, i32) {
    %c0_i32 = arith.constant 0 : i32
    %c0_i32_0 = arith.constant 0 : i32
    return %c0_i32, %arg1 : i32, i32
  }
  func.func @transform_2(%arg0: i32, %arg1: i32) -> (i32, i32) {
    %c0_i32 = arith.constant 0 : i32
    %c0_i32_0 = arith.constant 0 : i32
    return %c0_i32, %arg1 : i32, i32
  }
  func.func @transform_3(%arg0: i32, %arg1: i32) -> (i32, i32) {
    %c0_i32 = arith.constant 0 : i32
    %c0_i32_0 = arith.constant 0 : i32
    return %arg1, %c0_i32 : i32, i32
  }
  func.func @transform_4(%arg0: i32, %arg1: i32) -> (i32, i32) {
    %c0_i32 = arith.constant 0 : i32
    %c0_i32_0 = arith.constant 0 : i32
    %c0_i32_1 = arith.constant 0 : i32
    return %c0_i32, %c0_i32_0 : i32, i32
  }
  func.func @transform_5(%arg0: i32, %arg1: i32) -> (i32, i32) {
    %c0_i32 = arith.constant 0 : i32
    %c0_i32_0 = arith.constant 0 : i32
    return %arg0, %c0_i32 : i32, i32
  }
}

</mosaic_0001>

<bundles_post_ra>
// kernel: tpu_custom_call.1
= control target key start
LH: loop header
LB: loop body
LE: loop exit
PB: predicated region body
PF: predicated region fallthrough
CT: control target
= control target key end

     0   :  { %10 = vsyncpa [#allocation3], 0  ;;  %s502_s0 = inlined_call_operand.hbm [shape: bf16[16,16], index: 0, kind: input, shape index: {}]   ;;  %s503_s1 = inlined_call_operand.hbm [shape: bf16[16,128], index: 1, kind: input, shape index: {}]   ;;  %s504_s2 = inlined_call_operand.vmem [shape: f32[1,128], index: 2, kind: input, shape index: {}]   ;;  %s505_s3 = inlined_call_operand.hbm [shape: bf16[128,128], index: 3, kind: input, shape index: {}]   ;;  %s506_s4 = inlined_call_operand.vmem [shape: f32[1,128], index: 4, kind: input, shape index: {}]   ;;  %s507_s5 = inlined_call_operand.hbm [shape: f32[16,128], index: 5, kind: output, shape index: {}]  }
   0x1   :  { %11 = vsyncpa [#allocation6], 0 }
   0x2   :  { %12 = vsyncpa [#allocation4], 0  ;;  %s444_s18 = smov [#allocation5]   ;;  %s445_s20 = smov [#allocation2]  }
   0x3   :  { %s30_s19 = sshll.u32 %s444_s18, 4  ;;  %s18_s21 = sshll.u32 %s445_s20, 4  ;;  %s31_s19 = int_to_ptr.vmem [resolvable:$true] %s30_s19  ;;  %s19_s21 = int_to_ptr.vmem [resolvable:$true] %s18_s21 }
   0x4   :  { %s366_s22 = scalar_lea.vmem %s31_s19, 128  ;;  %p371_p1 = scmp.lt.s32.totalorder %s31_s19, %s31_s19 }
   0x5   :  { %p367_p0 = scmp.ne.s32.totalorder %s31_s19, %s366_s22  ;;  %p372_p2 = scmp.lt.s32.totalorder %s366_s22, %s366_s22 }
   0x7   :  { %p373_p3 = por %p372_p2, %p371_p1 }
   0x9   :  { %p374_p4 = pnand %p373_p3, %p367_p0 }
   0xb   :  { %377 = shalt.err (!%p374_p4)
}
   0xc   :  { %s446_s23 = smov 64   ;;  %s447_s24 = smov 4  }
   0xd   :  { %36 = dma.hbm_to_vmem [thread:$0]  %s503_s1, 128, %s31_s19, [#allocation6], %s446_s23, %s446_s23, %s447_s24  }
   0xe   :  { %s386_s27 = scalar_lea.vmem %s19_s21, 128  ;;  %p391_p6 = scmp.lt.s32.totalorder %s19_s21, %s19_s21 }
   0xf   :  { %p387_p5 = scmp.ne.s32.totalorder %s19_s21, %s386_s27  ;;  %p392_p7 = scmp.lt.s32.totalorder %s386_s27, %s386_s27 }
  0x11   :  { %p393_p8 = por %p392_p7, %p391_p6 }
  0x13   :  { %p394_p9 = pnand %p393_p8, %p387_p5 }
  0x15   :  { %397 = shalt.err (!%p394_p9)
}
  0x16   :  { %24 = dma.hbm_to_vmem [thread:$0]  %s502_s0, 128, %s19_s21, [#allocation3], %s446_s23, %s446_s23, %s447_s24  }
  0x17   :  { %s448_s30 = smov [#allocation7]  }
  0x18   :  { %s44_s6 = sshll.u32 %s448_s30, 4  ;;  %s45_s6 = int_to_ptr.vmem [resolvable:$true] %s44_s6 }
  0x19   :  { %s406_s7 = scalar_lea.vmem %s45_s6, 1024  ;;  %p411_p11 = scmp.lt.s32.totalorder %s45_s6, %s45_s6 }
  0x1a   :  { %p407_p10 = scmp.ne.s32.totalorder %s45_s6, %s406_s7  ;;  %p412_p12 = scmp.lt.s32.totalorder %s406_s7, %s406_s7 }
  0x1c   :  { %p413_p13 = por %p412_p12, %p411_p11 }
  0x1e   :  { %p414_p0 = pnand %p413_p13, %p407_p10 }
  0x20   :  { %417 = shalt.err (!%p414_p0)
}
  0x21   :  { %50 = dma.hbm_to_vmem [thread:$0]  %s505_s3, 1024, %s45_s6, [#allocation6], %s446_s23, %s446_s23, %s447_s24  }
  0x22   :  { %438 = dma.done.wait [#allocation3], 128  }
  0x23   :  { %439 = vsyncadd [#allocation3], 4294967168 }
  0x24   :  { %440 = dma.done.wait [#allocation6], 1152  }
  0x25   :  { %441 = vsyncadd [#allocation6], 4294966144  ;;  %v449_v0 = vmov 0.0   ;;  %vm450_vm0 = vmmov 0   ;;  %v344_v1 = vld [vmem:[#allocation5] sm:$0xff]   ;;  %v345_v2 = vld [vmem:[#allocation2] sm:$0xff]  }
  0x26   :  { %308 = vmatprep.subr.bf16.mxu0 %v449_v0  ;;  %310 = vmatprep.mubr.msk.bf16.mxu0 %vm450_vm0, %v449_v0  ;;  %vm99_vm1 = vcmask 130048   ;;  %v346_v3 = vld [vmem:[#allocation7 + $0x38] sm:$0xff]   ;;  %v347_v4 = vld [vmem:[#allocation7 + $0x30] sm:$0xff]   ;;  %v348_v5 = vld [vmem:[#allocation7 + $0x28] sm:$0xff]   ;;  %s451_s10 = smov [#allocation8]  }
  0x27   :  { %314 = vmatprep.subr.bf16.mxu1 %v449_v0  ;;  %330 = vmatprep.mubr.msk.bf16.mxu1 %vm450_vm0, %v449_v0  ;;  %v349_v6 = vld [vmem:[#allocation7 + $0x20] sm:$0xff]   ;;  %v350_v7 = vld [vmem:[#allocation7 + $0x18] sm:$0xff]   ;;  %v351_v8 = vld [vmem:[#allocation7 + $0x10] sm:$0xff]   ;;  %s271_s11 = sshll.u32 %s451_s10, 4  ;;  %s272_s11 = int_to_ptr.vmem [resolvable:$true] %s271_s11 }
  0x28   :  { %309 = vmatpush3.bf16.msra.mxu0 %v344_v1  ;;  %315 = vmatpush3.bf16.msra.mxu1 %v346_v3  ;;  %v352_v9 = vld [vmem:[#allocation7 + $0x8] sm:$0xff]   ;;  %v353_v10 = vld [vmem:[#allocation7] sm:$0xff]   ;;  %v285_v11 = vld [vmem:[%s504_s2] ss:$0 sm:$0xff]  ;;  %s418_s12 = scalar_lea.vmem %s272_s11, 256  ;;  %p423_p2 = scmp.lt.s32.totalorder %s272_s11, %s272_s11 }
  0x29   :  { %316 = vmatprep.subr.bf16.mxu1 %v449_v0  ;;  %v284_v29 = vld [vmem:[%s506_s4] ss:$0 sm:$0xff]  ;;  %p419_p1 = scmp.ne.s32.totalorder %s272_s11, %s418_s12  ;;  %p424_p3 = scmp.lt.s32.totalorder %s418_s12, %s418_s12 }
  0x2b   :  { %311 = vmatmul.mubr.msk.bf16.vlgmr.msra.gmra.mxu0 %vm99_vm1, %v345_v2  ;;  %p425_p4 = por %p424_p3, %p423_p2 }
  0x2c   :  { %317 = vmatpush3.bf16.msra.mxu1 %v347_v4 }
  0x2d   :  { %318 = vmatprep.subr.bf16.mxu1 %v449_v0  ;;  %p426_p5 = pnand %p425_p4, %p419_p1 }
  0x30   :  { %319 = vmatpush3.bf16.msra.mxu1 %v348_v5 }
  0x31   :  { %320 = vmatprep.subr.bf16.mxu1 %v449_v0 }
  0x34   :  { %321 = vmatpush3.bf16.msra.mxu1 %v349_v6 }
  0x35   :  { %322 = vmatprep.subr.bf16.mxu1 %v449_v0 }
  0x38   :  { %323 = vmatpush3.bf16.msra.mxu1 %v350_v7 }
  0x39   :  { %324 = vmatprep.subr.bf16.mxu1 %v449_v0 }
  0x3c   :  { %325 = vmatpush3.bf16.msra.mxu1 %v351_v8 }
  0x3d   :  { %326 = vmatprep.subr.bf16.mxu1 %v449_v0 }
  0x40   :  { %327 = vmatpush3.bf16.msra.mxu1 %v352_v9 }
  0x41   :  { %328 = vmatprep.subr.bf16.mxu1 %v449_v0 }
  0x44   :  { %329 = vmatpush3.bf16.msra.mxu1 %v353_v10 }
  0xeb   :  { %v137_v12 = vpop.f32.mrf.mxu0 }
  0xec   :  { %v138_v13 = vadd.f32 %v285_v11, %v137_v12 }
  0xed   :  { %v312_v14 = vpop.f32.mrf.mxu0 }
  0xee   :  { %v146_v15 = vmul.f32 0.70710677, %v138_v13  ;;  %v144_v23 = vmul.f32 0.5, %v138_v13 }
  0xef   :  { %v140_v16 = vpop.f32.mrf.mxu0 }
  0xf0   :  { %354 = verf.f32 %v146_v15  ;;  %v141_v17 = vadd.f32 %v285_v11, %v140_v16 }
  0xf1   :  { %v313_v18 = vpop.f32.mrf.mxu0 }
  0xf2   :  { %v147_v19 = vmul.f32 0.70710677, %v141_v17  ;;  %v145_v24 = vmul.f32 0.5, %v141_v17 }
  0xf4   :  { %356 = verf.f32 %v147_v19 }
  0xfd   :  { %v355_v20 = vpop.eup %354 }
  0xfe   :  { %v150_v21 = vadd.f32 1.0, %v355_v20 }
 0x100   :  { %v152_v26 = vmul.f32 %v150_v21, %v144_v23 }
 0x101   :  { %v357_v22 = vpop.eup %356 }
 0x102   :  { %v151_v25 = vadd.f32 1.0, %v357_v22 }
 0x104   :  { %v153_v27 = vmul.f32 %v151_v25, %v145_v24 }
 0x106   :  { %v156_v28 = vpack.c.bf16 %v153_v27, %v152_v26 }
 0x108   :  { %331 = vmatmul.mubr.bf16.vlgmr.msra.gmra.mxu1 %v156_v28 }
 0x1c8   :  { %v255_v30 = vpop.f32.mrf.mxu1 }
 0x1c9   :  { %v262_v31 = vadd.f32 %v284_v29, %v255_v30 }
 0x1ca   :  { %v332_v32 = vpop.f32.mrf.mxu1 }
 0x1cb   :  { %264 = vst [vmem:[#allocation8] sm:$0xff] %v262_v31 }
 0x1cc   :  { %v258_v33 = vpop.f32.mrf.mxu1 }
 0x1cd   :  { %v263_v34 = vadd.f32 %v284_v29, %v258_v33 }
 0x1ce   :  { %v333_v35 = vpop.f32.mrf.mxu1 }
 0x1cf   :  { %265 = vst [vmem:[#allocation8 + $0x8] sm:$0xff] %v263_v34 }
 0x1d0   :  { %429 = shalt.err (!%p426_p5)
}
 0x1d1   :  { %s452_s13 = smov 128   ;;  %s453_s4 = smov 8  }
 0x1d2   :  { %277 = dma.vmem_to_hbm [thread:$0]  %s272_s11, 256, %s507_s5, [#allocation4], %s452_s13, %s452_s13, %s453_s4  }
 0x1d3   :  { %442 = dma.done.wait [#allocation4], 256  }
 0x1d4   :  { %443 = vsyncadd [#allocation4], 4294967040 }
 0x1d5   :  { %281 = vsyncpa [#allocation3], 1 }
 0x1d6   :  { %282 = vsyncpa [#allocation6], 1 }
 0x1d7   :  { %283 = vsyncpa [#allocation4], 1 }

</bundles_post_ra>
